<compile_context>
chip_gen: v5e
topology: v5e:2x2
jax: 0.10.0
libtpu: 0.0.40
codegen_flags: <defaults>
</compile_context>

<pallas_src>
import jax
import jax.numpy as jnp
import numpy as np
from jax.experimental import pallas as pl
from jax.experimental.pallas import tpu as pltpu


def _sum_attention_kernel(x_ref, w_ref, b_ref, v_ref, o_ref):
    # x_ref: (Bb, T, D); w_ref: (D, A); b_ref: (1, A); v_ref: (1, A); o_ref: (Bb, D)
    Bb, T, D = x_ref.shape
    A = w_ref.shape[1]

    x = x_ref[...]                                          # (Bb, T, D), stream dtype
    x_f32 = x.astype(jnp.float32)                           # f32 for VPU work (v5e-safe)

    # u = tanh(x @ W + b) on the flattened (Bb*T, D) view -> big-M MXU matmul.
    # The matmul runs in the input dtype (f32 or bf16) with f32 accumulation.
    x2 = x.reshape(Bb * T, D)
    u = jnp.tanh(
        jnp.dot(x2, w_ref[...], preferred_element_type=jnp.float32)
        + b_ref[...].astype(jnp.float32)
    )                                                       # (Bb*T, A) f32

    # scores s = u . v : VPU broadcast-multiply + lane (XLU) reduction,
    # laid out lane-dense as (Bb, T) for the softmax.
    u3 = u.reshape(Bb, T, A)
    s = jnp.sum(u3 * v_ref[...].astype(jnp.float32).reshape(1, 1, A), axis=-1)  # (Bb, T)

    # numerically stable softmax over the sequence (lane) axis; exact reciprocal.
    m = jnp.max(s, axis=-1, keepdims=True)                  # (Bb, 1)
    e = jnp.exp(s - m)                                      # (Bb, T)
    denom = jnp.sum(e, axis=-1, keepdims=True)              # (Bb, 1)
    alpha = e / denom                                       # (Bb, T)  exact

    # weighted sum over the sequence: VPU multiply + sublane reduction, f32 acc.
    out = jnp.sum(alpha[:, :, None] * x_f32, axis=1)        # (Bb, D)
    o_ref[...] = out.astype(o_ref.dtype)


def _round_up(x, m):
    return ((x + m - 1) // m) * m


def _vmem_plan():
    """Generation-aware (limit, tiling_budget) in bytes.

    v5e/v6e (128 MiB VMEM/TC) -> ~105 MiB limit / ~47 MiB budget.
    v7x     ( 64 MiB VMEM/TC) -> ~52  MiB limit / ~24 MiB budget.
    Falls back to the conservative v7x numbers if the query is unavailable
    (e.g. interpret mode on CPU).
    """
    cap = 64 * 1024 * 1024
    try:
        info = pltpu.get_tpu_info()
        cap = int(getattr(info, "vmem_capacity_bytes", cap) or cap)
    except Exception:
        pass
    limit = min(int(cap * 0.82), cap - (8 << 20))
    limit = max(limit, 32 << 20)
    budget = int(limit * 0.45)
    return limit, budget


def _pick_batch_tile(B, T, D, A, x_itemsize, budget):
    """Choose the batch tile Bb and (possibly padded) batch size B_pad.

    Bb is either the whole (padded) batch or a multiple of 8 (sublane-aligned
    output slab).  Prefers >= 2 grid steps when the batch splits cleanly, so
    both v7x TensorCores get work under dimension_semantics=("parallel",).
    """
    weight_bytes = 2 * (D * A + 2 * A) * 4          # double-buffered W/b/v (f32 bound)
    per_b = (
        2 * T * D * x_itemsize                      # x input stream, double-buffered
        + 2 * T * D * 4                             # f32 upcast of x + alpha*x temporary
        + T * A * 4                                 # u
        + 2 * D * 4                                 # output slab, double-buffered
        + 16 * T * 4                                # scores / softmax scratch + slack
    )
    max_bb = max(1, (budget - weight_bytes) // per_b)

    if B <= max_bb:
        # Whole batch fits in one slab.  Split into two well-formed halves when
        # possible so the grid has >= 2 steps (v7x megacore + pipeline overlap).
        if B >= 16 and (B // 2) % 8 == 0:
            return B // 2, B
        return B, B

    # Largest multiple of 8 that divides B and fits the budget.
    bb = min(max_bb, B)
    bb -= bb % 8
    while bb >= 8:
        if B % bb == 0:
            return bb, B
        bb -= 8

    # No well-formed divisor: pad the batch to a multiple of a budget-sized tile.
    # Padded rows are zeros; their outputs are discarded in the wrapper.
    bb = max(8, (min(max_bb, B) // 8) * 8)
    return bb, _round_up(B, bb)


def sum_attention(inputs, w, b, v, *, compute_dtype=None):
    """inputs: (B, T, D); w: (D, A); b: (A,); v: (A,).  Returns (B, D).

    If `compute_dtype` is given (e.g. jnp.bfloat16) the (B, T, D) stream and W
    are cast to it before the kernel; accumulation stays in f32.  Passing bf16
    inputs directly has the same effect without the extra cast pass.
    """
    B, T, D = inputs.shape
    A = w.shape[1]
    orig_dtype = inputs.dtype

    if T == 1:
        # forward() early-exit branch: dropout(p=0)(inputs.squeeze()) is identity.
        return inputs.reshape(B, D)

    # TODO(synk): training-time dropout (p > 0) is not implemented; the module
    # default p=0 is an identity and is omitted here.

    if compute_dtype is not None:
        inputs = inputs.astype(compute_dtype)
        w = w.astype(compute_dtype)

    # Zero-pad A to a multiple of 128 so the matmul N-dim / tanh / u.v reduce
    # stay lane-dense.  Padded columns contribute tanh(0 + 0) * 0 = 0.
    A_pad = _round_up(A, 128)
    if A_pad != A:
        w = jnp.pad(w, ((0, 0), (0, A_pad - A)))
        b = jnp.pad(b, ((0, A_pad - A),))
        v = jnp.pad(v, ((0, A_pad - A),))
    b2 = b.reshape(1, A_pad).astype(jnp.float32)
    v2 = v.reshape(1, A_pad).astype(jnp.float32)

    vmem_limit, budget = _vmem_plan()
    x_itemsize = jnp.dtype(inputs.dtype).itemsize
    Bb, B_pad = _pick_batch_tile(B, T, D, A_pad, x_itemsize, budget)
    if B_pad != B:
        inputs = jnp.pad(inputs, ((0, B_pad - B), (0, 0), (0, 0)))

    grid = (B_pad // Bb,)

    out = pl.pallas_call(
        _sum_attention_kernel,
        out_shape=jax.ShapeDtypeStruct((B_pad, D), orig_dtype),
        grid_spec=pltpu.PrefetchScalarGridSpec(
            num_scalar_prefetch=0,
            grid=grid,
            in_specs=[
                pl.BlockSpec((Bb, T, D), lambda i: (i, 0, 0)),
                pl.BlockSpec((D, A_pad), lambda i: (0, 0)),
                pl.BlockSpec((1, A_pad), lambda i: (0, 0)),
                pl.BlockSpec((1, A_pad), lambda i: (0, 0)),
            ],
            out_specs=pl.BlockSpec((Bb, D), lambda i: (i, 0)),
        ),
        compiler_params=pltpu.CompilerParams(
            dimension_semantics=("parallel",),
            vmem_limit_bytes=vmem_limit,
        ),
    )(inputs, w, b2, v2)

    return out[:B] if B_pad != B else out


def _reference(inputs, w, b, v):
    # pure-JAX reference mirroring the PyTorch forward (dropout p=0)
    u = jnp.tanh(jnp.einsum("btd,da->bta", inputs, w) + b)
    s = jnp.einsum("bta,a->bt", u, v)
    alpha = jax.nn.softmax(s, axis=1)
    return jnp.einsum("bt,btd->bd", alpha, inputs)


if __name__ == "__main__":
    # Small, deterministic shapes: batch=2, seq=8, input_dim=32, attention_dim=16
    B, T, D, A = 2, 8, 32, 16
    key = jax.random.PRNGKey(0)
    kx, kw, kb, kv = jax.random.split(key, 4)

    x = jax.random.normal(kx, (B, T, D), dtype=jnp.float32)
    # Deterministic "init_tensor"-style (uniform) parameter init.
    limit_w = 1.0 / np.sqrt(D)
    limit_v = 1.0 / np.sqrt(A)
    w = jax.random.uniform(kw, (D, A), minval=-limit_w, maxval=limit_w, dtype=jnp.float32)
    b = jax.random.uniform(kb, (A,), minval=-limit_w, maxval=limit_w, dtype=jnp.float32)
    v = jax.random.uniform(kv, (A,), minval=-limit_v, maxval=limit_v, dtype=jnp.float32)

    # Full-precision path: exact softmax reciprocal -> tight agreement with f32 ref.
    out = sum_attention(x, w, b, v)
    out = jax.block_until_ready(out)
    ref = _reference(x, w, b, v)
    np.testing.assert_allclose(np.asarray(out), np.asarray(ref), rtol=1e-4, atol=1e-4)

    # bf16-input path (halved HBM traffic for the dominant (B,T,D) stream).
    # Compare against the f32 reference evaluated on the same quantized operands.
    out_bf = sum_attention(x, w, b, v, compute_dtype=jnp.bfloat16)
    out_bf = jax.block_until_ready(out_bf)
    ref_bf = _reference(
        x.astype(jnp.bfloat16).astype(jnp.float32),
        w.astype(jnp.bfloat16).astype(jnp.float32),
        b, v,
    )
    np.testing.assert_allclose(np.asarray(out_bf), np.asarray(ref_bf), rtol=1e-2, atol=1e-2)

    print("KERNEL_OK")
</pallas_src>

<mosaic_0001>
module attributes {stable_mosaic.version = 11 : i64} {
  func.func @_sum_attention_kernel(%arg0: i32, %arg1: memref<2x8x32xf32, #tpu.memory_space<vmem>>, %arg2: memref<32x128xf32, #tpu.memory_space<vmem>>, %arg3: memref<1x128xf32, #tpu.memory_space<vmem>>, %arg4: memref<1x128xf32, #tpu.memory_space<vmem>>, %arg5: memref<2x32xf32, #tpu.memory_space<vmem>>) attributes {dimension_semantics = [#tpu.dimension_semantics<parallel>], iteration_bounds = array<i64: 1>, scalar_prefetch = 0 : i64, scratch_operands = 0 : i64, tpu.core_type = #tpu.core_type<tc>, window_params = [{transform_indices = @transform_0, window_bounds = array<i64: 2, 8, 32>}, {pipeline_mode = #tpu.pipeline_mode<synchronous>, transform_indices = @transform_1, window_bounds = array<i64: 32, 128>}, {pipeline_mode = #tpu.pipeline_mode<synchronous>, transform_indices = @transform_2, window_bounds = array<i64: 1, 128>}, {pipeline_mode = #tpu.pipeline_mode<synchronous>, transform_indices = @transform_3, window_bounds = array<i64: 1, 128>}, {transform_indices = @transform_4, window_bounds = array<i64: 2, 32>}]} {
    %c0 = arith.constant 0 : index
    %c0_0 = arith.constant 0 : index
    %c0_1 = arith.constant 0 : index
    %0 = vector.load %arg1[%c0, %c0_0, %c0_1] : memref<2x8x32xf32, #tpu.memory_space<vmem>>, vector<2x8x32xf32>
    %1 = vector.shape_cast %0 : vector<2x8x32xf32> to vector<16x32xf32>
    %c0_2 = arith.constant 0 : index
    %c0_3 = arith.constant 0 : index
    %2 = vector.load %arg2[%c0_2, %c0_3] : memref<32x128xf32, #tpu.memory_space<vmem>>, vector<32x128xf32>
    %cst = arith.constant dense<0.000000e+00> : vector<16x128xf32>
    %3 = tpu.matmul %1, %2, %cst {dimension_numbers = #tpu.dot_dimension_numbers<[1], [0], [0], [1], [0, 0, 1, 1], [], []>} : vector<16x32xf32>, vector<32x128xf32>, vector<16x128xf32> -> vector<16x128xf32>
    %c0_4 = arith.constant 0 : index
    %c0_5 = arith.constant 0 : index
    %4 = vector.load %arg3[%c0_4, %c0_5] : memref<1x128xf32, #tpu.memory_space<vmem>>, vector<1x128xf32>
    %5 = vector.broadcast %4 : vector<1x128xf32> to vector<16x128xf32>
    %6 = arith.addf %3, %5 : vector<16x128xf32>
    %7 = math.tanh %6 : vector<16x128xf32>
    %8 = vector.shape_cast %7 : vector<16x128xf32> to vector<2x8x128xf32>
    %c0_6 = arith.constant 0 : index
    %c0_7 = arith.constant 0 : index
    %9 = vector.load %arg4[%c0_6, %c0_7] : memref<1x128xf32, #tpu.memory_space<vmem>>, vector<1x128xf32>
    %10 = vector.shape_cast %9 : vector<1x128xf32> to vector<1x1x128xf32>
    %11 = vector.broadcast %10 : vector<1x1x128xf32> to vector<2x8x128xf32>
    %12 = arith.mulf %8, %11 : vector<2x8x128xf32>
    %cst_8 = arith.constant dense<0.000000e+00> : vector<2x8xf32>
    %13 = vector.multi_reduction <add>, %12, %cst_8 [2] : vector<2x8x128xf32> to vector<2x8xf32>
    %cst_9 = arith.constant dense<0xFF800000> : vector<2xf32>
    %14 = vector.multi_reduction <maximumf>, %13, %cst_9 [1] : vector<2x8xf32> to vector<2xf32>
    %15 = vector.shape_cast %14 : vector<2xf32> to vector<2x1xf32>
    %16 = vector.broadcast %15 : vector<2x1xf32> to vector<2x8xf32>
    %17 = arith.subf %13, %16 : vector<2x8xf32>
    %18 = math.exp %17 : vector<2x8xf32>
    %cst_10 = arith.constant dense<0.000000e+00> : vector<2xf32>
    %19 = vector.multi_reduction <add>, %18, %cst_10 [1] : vector<2x8xf32> to vector<2xf32>
    %20 = vector.shape_cast %19 : vector<2xf32> to vector<2x1xf32>
    %21 = vector.broadcast %20 : vector<2x1xf32> to vector<2x8xf32>
    %22 = arith.divf %18, %21 : vector<2x8xf32>
    %23 = vector.shape_cast %22 : vector<2x8xf32> to vector<2x8x1xf32>
    %24 = vector.broadcast %23 : vector<2x8x1xf32> to vector<2x8x32xf32>
    %25 = arith.mulf %24, %0 : vector<2x8x32xf32>
    %cst_11 = arith.constant dense<0.000000e+00> : vector<2x32xf32>
    %26 = vector.multi_reduction <add>, %25, %cst_11 [1] : vector<2x8x32xf32> to vector<2x32xf32>
    %c0_12 = arith.constant 0 : index
    %c0_13 = arith.constant 0 : index
    %27 = vector.load %arg5[%c0_12, %c0_13] : memref<2x32xf32, #tpu.memory_space<vmem>>, vector<2x32xf32>
    tpu.vector_store %arg5[%c0_12, %c0_13], %26 {strides = array<i32>} : memref<2x32xf32, #tpu.memory_space<vmem>>, vector<2x32xf32>,
    return
  }
  func.func @transform_0(%arg0: i32) -> (i32, i32, i32) {
    %c0_i32 = arith.constant 0 : i32
    %c0_i32_0 = arith.constant 0 : i32
    %c0_i32_1 = arith.constant 0 : i32
    return %arg0, %c0_i32, %c0_i32_0 : i32, i32, i32
  }
  func.func @transform_1(%arg0: i32) -> (i32, i32) {
    %c0_i32 = arith.constant 0 : i32
    %c0_i32_0 = arith.constant 0 : i32
    %c0_i32_1 = arith.constant 0 : i32
    return %c0_i32, %c0_i32_0 : i32, i32
  }
  func.func @transform_2(%arg0: i32) -> (i32, i32) {
    %c0_i32 = arith.constant 0 : i32
    %c0_i32_0 = arith.constant 0 : i32
    %c0_i32_1 = arith.constant 0 : i32
    return %c0_i32, %c0_i32_0 : i32, i32
  }
  func.func @transform_3(%arg0: i32) -> (i32, i32) {
    %c0_i32 = arith.constant 0 : i32
    %c0_i32_0 = arith.constant 0 : i32
    %c0_i32_1 = arith.constant 0 : i32
    return %c0_i32, %c0_i32_0 : i32, i32
  }
  func.func @transform_4(%arg0: i32) -> (i32, i32) {
    %c0_i32 = arith.constant 0 : i32
    %c0_i32_0 = arith.constant 0 : i32
    return %arg0, %c0_i32 : i32, i32
  }
}

</mosaic_0001>

<bundles_post_ra>
// kernel: tpu_custom_call.1
= control target key start
LH: loop header
LB: loop body
LE: loop exit
PB: predicated region body
PF: predicated region fallthrough
CT: control target
= control target key end

     0   :  { %9 = vsyncpa [#allocation3], 0  ;;  %s396_s0 = inlined_call_operand.hbm [shape: f32[2,8,32], index: 0, kind: input, shape index: {}]   ;;  %s397_s1 = inlined_call_operand.hbm [shape: f32[32,128], index: 1, kind: input, shape index: {}]   ;;  %s398_s2 = inlined_call_operand.vmem [shape: f32[1,128], index: 2, kind: input, shape index: {}]   ;;  %s399_s3 = inlined_call_operand.vmem [shape: f32[1,128], index: 3, kind: input, shape index: {}]   ;;  %s400_s4 = inlined_call_operand.hbm [shape: f32[2,32], index: 4, kind: output, shape index: {}]  }
   0x1   :  { %10 = vsyncpa [#allocation6], 0 }
   0x2   :  { %11 = vsyncpa [#allocation4], 0  ;;  %s16_s17 = sshll.u32 %s396_s0, 4  ;;  %s333_s18 = smov [#allocation2]   ;;  %s17_s17 = int_to_ptr.hbm [resolvable:$true] %s16_s17 }
   0x3   :  { %s18_s19 = sshll.u32 %s333_s18, 4  ;;  %s29_s22 = sshll.u32 %s397_s1, 4  ;;  %s19_s19 = int_to_ptr.vmem [resolvable:$true] %s18_s19  ;;  %s30_s22 = int_to_ptr.hbm [resolvable:$true] %s29_s22 }
   0x4   :  { %s334_s23 = smov 128   ;;  %s335_s24 = smov 8  }
   0x5   :  { %24 = dma.hbm_to_vmem [thread:$0]  %s17_s17, 256, %s19_s19, [#allocation3], %s334_s23, %s334_s23, %s335_s24  }
   0x6   :  { %s336_s25 = smov [#allocation5]  }
   0x7   :  { %s31_s26 = sshll.u32 %s336_s25, 4  ;;  %s32_s26 = int_to_ptr.vmem [resolvable:$true] %s31_s26 }
   0x8   :  { %37 = dma.hbm_to_vmem [thread:$0]  %s30_s22, 512, %s32_s26, [#allocation6], %s334_s23, %s334_s23, %s335_s24  }
   0x9   :  { %327 = dma.done.wait [#allocation3], 256  }
   0xa   :  { %328 = vsyncadd [#allocation3], 4294967040 }
   0xb   :  { %329 = dma.done.wait [#allocation6], 512  }
   0xc   :  { %330 = vsyncadd [#allocation6], 4294966784  ;;  %v55_v0 = vld [vmem:[#allocation5 + $0x18] sm:$0xff]  ;;  %v54_v1 = vld [vmem:[#allocation5 + $0x10] sm:$0xff]  ;;  %vm60_vm0 = vcmask 261120   ;;  %v104_v17 = vlaneseq  ;;  %vm108_vm1 = vcmask 1041409  }
   0xd   :  { %79 = vmatpush.msra.mxu0 %v55_v0  ;;  %228 = vmatpush.msra.mxu1 %v55_v0  ;;  %v53_v2 = vld [vmem:[#allocation5 + $0x8] sm:$0xff]  ;;  %v52_v3 = vld [vmem:[#allocation5] sm:$0xff]  ;;  %v370_v4 = vld [vmem:[#allocation2] sm:$0xff]  ;;  %vm111_vm2 = vcmask 58368   ;;  %v337_v24 = vmov 0   ;;  %s215_s5 = sshll.u32 %s400_s4, 4  ;;  %s216_s5 = int_to_ptr.hbm [resolvable:$true] %s215_s5 }
   0xe   :  { %v372_v5 = vld [vmem:[#allocation2 + $0x8] sm:$0xff]  ;;  %v241_v6 = vld [vmem:[%s398_s2] ss:$0 sm:$0xff]  ;;  %v105_v18 = vand.u32 127, %v104_v17  ;;  %239 = vset.pattern.permute.xlu2 %v337_v24  ;;  %238 = vset.pattern.permute.xlu1 %v337_v24  ;;  %s338_s2 = smov [#allocation7]   ;;  %vm206_vm11 = vcmask 254976  }
   0xf   :  { %80 = vmatpush.msra.mxu0 %v54_v1  ;;  %229 = vmatpush.msra.mxu1 %v54_v1  ;;  %v242_v11 = vld [vmem:[%s399_s3] ss:$0 sm:$0xff]  ;;  %s213_s3 = sshll.u32 %s338_s2, 4  ;;  %s214_s3 = int_to_ptr.vmem [resolvable:$true] %s213_s3 }
  0x10   :  { %240 = vset.pattern.permute.xlu0 %v337_v24 }
  0x11   :  { %81 = vmatpush.msra.mxu0 %v53_v2  ;;  %230 = vmatpush.msra.mxu1 %v53_v2 }
  0x13   :  { %82 = vmatpush.msra.mxu0 %v52_v3  ;;  %231 = vmatpush.msra.mxu1 %v52_v3 }
  0x14   :  { %226 = vmatmul.msk.f32.vlgmr.msra.gmra.mxu0 %vm60_vm0, %v370_v4  ;;  %227 = vmatmul.msk.f32.vlgmr.msra.gmra.mxu1 %vm60_vm0, %v372_v5 }
  0x91   :  { %v84_v7 = vpop.f32.mrf.mxu0  ;;  %v87_v8 = vpop.f32.mrf.mxu1 }
  0x92   :  { %v85_v9 = vadd.f32 %v241_v6, %v84_v7  ;;  %v88_v10 = vadd.f32 %v241_v6, %v87_v8 }
  0x94   :  { %243 = vtanh.f32 %v85_v9 }
  0x95   :  { %245 = vtanh.f32 %v88_v10 }
  0x9a   :  { %v244_v12 = vpop.eup %243 }
  0x9b   :  { %v96_v13 = vmul.f32 %v244_v12, %v242_v11  ;;  %v246_v14 = vpop.eup %245 }
  0x9c   :  { %v97_v15 = vmul.f32 %v246_v14, %v242_v11 }
  0x9d   :  { %98 = vadd.xlane.f32.xlu0 %v96_v13 }
  0xa5   :  { %100 = vadd.xlane.f32.xlu0 %v97_v15 }
 0x110   :  { %v99_v16 = vpop.xlane.xlu0 %98 }
 0x111   :  { %v106_v20 = vperm.slane %v99_v16, %v105_v18 }
 0x118   :  { %v101_v19 = vpop.xlane.xlu0 %100 }
 0x119   :  { %v107_v21 = vperm.slane %v101_v19, %v105_v18 }
 0x11b   :  { %v109_v22 = vsel %vm108_vm1, %v107_v21, %v106_v20 }
 0x11c   :  { %v112_v23 = vsel %vm111_vm2, %v109_v22, -inf }
 0x11d   :  { %113 = vmax.xlane.f32.xlu1 %v112_v23 }
 0x190   :  { %v114_v25 = vpop.xlane.xlu1 %113 }
 0x191   :  { %v116_v26 = vperm.slane %v114_v25, 0  ;;  %v117_v27 = vperm.slane %v114_v25, 1 }
 0x193   :  { %v120_v28 = vsub.f32 %v99_v16, %v116_v26  ;;  %v121_v29 = vsub.f32 %v101_v19, %v117_v27 }
 0x195   :  { %v122_v30 = vmul.f32 1.442695, %v120_v28  ;;  %v124_v31 = vmul.f32 1.442695, %v121_v29 }
 0x197   :  { %247 = vpow2.f32 %v122_v30 }
 0x198   :  { %249 = vpow2.f32 %v124_v31 }
 0x19d   :  { %v248_v32 = vpop.eup %247 }
 0x19e   :  { %v250_v33 = vpop.eup %249  ;;  %129 = vperm.xlu1 %238, %v248_v32  }
 0x19f   :  { %132 = vperm.xlu2 %239, %v250_v33  }
 0x1f9   :  { %v133_v34 = vpop.permute.xlu2 %132 }
 0x1fa   :  { %v135_v36 = vperm.slane %v133_v34, %v105_v18 }
 0x210   :  { %v130_v35 = vpop.permute.xlu1 %129 }
 0x211   :  { %v134_v37 = vperm.slane %v130_v35, %v105_v18 }
 0x213   :  { %v136_v38 = vsel %vm108_vm1, %v135_v36, %v134_v37 }
 0x214   :  { %v138_v39 = vsel %vm111_vm2, %v136_v38, 0.0 }
 0x215   :  { %139 = vadd.xlane.f32.xlu2 %v138_v39 }
 0x288   :  { %v140_v40 = vpop.xlane.xlu2 %139 }
 0x289   :  { %v142_v41 = vperm.slane %v140_v40, 0  ;;  %v143_v42 = vperm.slane %v140_v40, 1 }
 0x28b   :  { %251 = vrcp.f32 %v142_v41  ;;  %v157_v49 = vand.u32 2147483648, %v142_v41  ;;  %v172_v50 = vand.u32 2147483648, %v143_v42  ;;  %v155_v52 = vand.u32 2147483647, %v142_v41 }
 0x28c   :  { %253 = vrcp.f32 %v143_v42  ;;  %v170_v54 = vand.u32 2147483647, %v143_v42  ;;  %vm151_vm5 = vweird.f32 %v142_v41  ;;  %vm166_vm6 = vweird.f32 %v143_v42 }
 0x28d   :  { %v158_v57 = vor.u32 1.1754944e-38, %v157_v49  ;;  %v173_v58 = vor.u32 1.1754944e-38, %v172_v50  ;;  %vm156_vm9 = vcmp.eq.f32.partialorder %v155_v52, 8.507059e+37 }
 0x28e   :  { %vm171_vm10 = vcmp.eq.f32.partialorder %v170_v54, 8.507059e+37 }
 0x291   :  { %v252_v43 = vpop.eup %251 }
 0x292   :  { %v254_v44 = vpop.eup %253  ;;  %v147_v45 = vmul.f32 %v252_v43, %v142_v41  ;;  %vm152_vm3 = vweird.f32 %v252_v43 }
 0x293   :  { %v162_v46 = vmul.f32 %v254_v44, %v143_v42  ;;  %vm167_vm4 = vweird.f32 %v254_v44  ;;  %vm153_vm7 = vmor %vm151_vm5, %vm152_vm3 }
 0x294   :  { %v148_v47 = vsub.f32 1.0, %v147_v45  ;;  %vm168_vm8 = vmor %vm166_vm6, %vm167_vm4 }
 0x295   :  { %v163_v48 = vsub.f32 1.0, %v162_v46 }
 0x296   :  { %v149_v51 = vmul.f32 %v252_v43, %v148_v47 }
 0x297   :  { %v164_v53 = vmul.f32 %v254_v44, %v163_v48 }
 0x298   :  { %v150_v55 = vadd.f32 %v252_v43, %v149_v51 }
 0x299   :  { %v165_v56 = vadd.f32 %v254_v44, %v164_v53 }
 0x29a   :  { %v154_v59 = vsel %vm153_vm7, %v252_v43, %v150_v55 }
 0x29b   :  { %v169_v60 = vsel %vm168_vm8, %v254_v44, %v165_v56  ;;  %v159_v61 = vsel %vm156_vm9, %v158_v57, %v154_v59 }
 0x29c   :  { %v174_v62 = vsel %vm171_vm10, %v173_v58, %v169_v60  ;;  %v160_v63 = vmul.f32 %v248_v32, %v159_v61 }
 0x29d   :  { %v175_v0 = vmul.f32 %v250_v33, %v174_v62 }
 0x29e   :  { %178 = vperm.xlu0 %240, %v160_v63  }
 0x29f   :  { %183 = vperm.xlu1 %238, %v175_v0  }
 0x310   :  { %v179_v1 = vpop.permute.xlu0 %178 }
 0x311   :  { %v184_v2 = vpop.permute.xlu1 %183  ;;  %v186_v3 = vmul.f32 %v179_v1, %v370_v4 }
 0x312   :  { %v187_v6 = vmul.f32 %v184_v2, %v372_v5 }
 0x313   :  { %v188_v7 = vsel %vm60_vm0, %v186_v3, 0.0 }
 0x314   :  { %v195_v8 = vsel %vm60_vm0, %v187_v6, 0.0  ;;  %v189_v9 = vrot.slane %v188_v7, 4 }
 0x315   :  { %v196_v10 = vrot.slane %v195_v8, 4 }
 0x316   :  { %v190_v11 = vadd.f32 %v189_v9, %v188_v7 }
 0x317   :  { %v197_v12 = vadd.f32 %v196_v10, %v195_v8 }
 0x318   :  { %v191_v13 = vrot.slane %v190_v11, 2 }
 0x319   :  { %v198_v14 = vrot.slane %v197_v12, 2 }
 0x31a   :  { %v192_v15 = vadd.f32 %v191_v13, %v190_v11 }
 0x31b   :  { %v199_v16 = vadd.f32 %v198_v14, %v197_v12 }
 0x31c   :  { %v193_v17 = vrot.slane %v192_v15, 1 }
 0x31d   :  { %v200_v18 = vrot.slane %v199_v16, 1 }
 0x31e   :  { %v194_v4 = vadd.f32 %v193_v17, %v192_v15 }
 0x31f   :  { %v201_v5 = vadd.f32 %v200_v18, %v199_v16 }
 0x321   :  { %v204_v19 = vsel %vm108_vm1, %v201_v5, %v194_v4 }
 0x322   :  { %207 = vst.msk [vmem:[#allocation7] sm:$0x3] %vm206_vm11, %v204_v19 }
 0x323   :  { %218 = dma.vmem_to_hbm [thread:$0]  %s214_s3, 32, %s216_s5, [#allocation4]  }
 0x324   :  { %331 = dma.done.wait [#allocation4], 32  }
 0x325   :  { %332 = vsyncadd [#allocation4], 4294967264 }
 0x326   :  { %223 = vsyncpa [#allocation3], 1 }
 0x327   :  { %224 = vsyncpa [#allocation6], 1 }
 0x328   :  { %225 = vsyncpa [#allocation4], 1 }

</bundles_post_ra>
